<compile_context>
chip_gen: v7x
topology: tpu7x:2x2x1
jax: 0.10.0
libtpu: 0.0.40
codegen_flags: <defaults>
</compile_context>

<pallas_src>
import jax
import jax.numpy as jnp
from jax.experimental import pallas as pl
from jax.experimental.pallas import tpu as pltpu


def _round_up(x, m):
    return ((x + m - 1) // m) * m


def _conditioner_kernel(x_ref, w_ref, b_ref, o_ref):
    """Dense condition model tile: o = x @ W + b.

    x_ref: (tm, D_in)    bf16  (row tile, double-buffered by BlockSpec)
    w_ref: (D_in, D_out) bf16  (VMEM-resident across the grid)
    b_ref: (1, D_out)    f32   (VMEM-resident across the grid)
    o_ref: (tm, D_out)   f32
    """
    acc = jnp.dot(x_ref[...], w_ref[...],
                  preferred_element_type=jnp.float32)   # MXU, f32 accumulate
    o_ref[...] = acc + b_ref[...]                        # VPU bias add (f32)


def _pick_tm(M, D_in, D_out, requested, budget_bytes=12 << 20):
    """Largest row-tile (multiple of 8) whose double-buffered x+out footprint
    fits the VMEM budget.  Conservative enough for v7x (64 MiB physical)."""
    tm = min(requested, _round_up(M, 8))
    tm = max(8, _round_up(tm, 8))
    while tm > 8 and 2 * (tm * D_in * 2 + tm * D_out * 4) > budget_bytes:
        tm = max(8, _round_up(tm // 2, 8))
    return tm


def conditioner_forward(x, weight, bias, *, tm=512):
    """x: [B, S, D_in] -> [B, S, D_out] float32 (conditioning vectors)."""
    B, S, D_in = x.shape
    D_out = weight.shape[1]
    M = B * S

    # Flatten to a row-major slab; feature axis maps to TPU lanes.
    x2d = x.reshape(M, D_in).astype(jnp.bfloat16)
    w_bf16 = weight.astype(jnp.bfloat16)
    b2d = bias.reshape(1, D_out).astype(jnp.float32)

    # Tile M; pad rows so the grid divides evenly (sliced off afterwards).
    tm = _pick_tm(M, D_in, D_out, tm)
    M_pad = _round_up(M, tm)
    if M_pad != M:
        x2d = jnp.pad(x2d, ((0, M_pad - M), (0, 0)))
    grid = (M_pad // tm,)

    # Explicit VMEM limit with headroom; stays under v7x's 32 MiB scoped VMEM.
    per_iter = tm * D_in * 2 + tm * D_out * 4          # bf16 x tile + f32 out tile
    resident = D_in * D_out * 2 + 8 * D_out * 4        # bf16 W + (sublane-padded) bias
    vmem_limit = max(4 << 20, min(3 * (2 * per_iter + 2 * resident), 32 << 20))

    cost = pl.CostEstimate(
        flops=2 * M_pad * D_in * D_out,
        transcendentals=0,
        bytes_accessed=(M_pad * D_in * 2 + D_in * D_out * 2
                        + D_out * 4 + M_pad * D_out * 4),
    )

    out2d = pl.pallas_call(
        _conditioner_kernel,
        out_shape=jax.ShapeDtypeStruct((M_pad, D_out), jnp.float32),
        grid_spec=pl.GridSpec(
            grid=grid,
            in_specs=[
                pl.BlockSpec((tm, D_in), lambda i: (i, 0)),       # row tiles
                pl.BlockSpec((D_in, D_out), lambda i: (0, 0)),    # resident W
                pl.BlockSpec((1, D_out), lambda i: (0, 0)),       # resident bias
            ],
            out_specs=pl.BlockSpec((tm, D_out), lambda i: (i, 0)),
        ),
        compiler_params=pltpu.CompilerParams(
            dimension_semantics=("parallel",),   # shard row-tiles across TCs (v7x)
            vmem_limit_bytes=vmem_limit,
        ),
        cost_estimate=cost,
    )(x2d, w_bf16, b2d)

    if M_pad != M:
        out2d = out2d[:M]
    return out2d.reshape(B, S, D_out)


if __name__ == "__main__":
    # Small shapes consistent with a conditioning model; S=128 so the tiled
    # grid path (grid > 1) is exercised.  D_out lane-dense (128).
    # NOTE: at truly tiny shapes this op is launch-overhead-bound and should
    # be fused by XLA instead; the kernel targets the production-sized path.
    B, S, D_in, D_out = 2, 128, 32, 128

    key = jax.random.PRNGKey(0)
    kx, kw, kb = jax.random.split(key, 3)

    x = jax.random.normal(kx, (B, S, D_in), dtype=jnp.float32)
    # Deterministic parameter init (synthetic; no checkpoint load).
    weight = jax.random.normal(kw, (D_in, D_out), dtype=jnp.float32) * 0.02
    bias = jax.random.normal(kb, (D_out,), dtype=jnp.float32) * 0.01

    out = conditioner_forward(x, weight, bias, tm=128)   # grid of 2 row-tiles
    out = jax.block_until_ready(out)

    # Reference in plain JAX with the same bf16 input / f32 accumulate recipe.
    xr = x.reshape(B * S, D_in).astype(jnp.bfloat16).astype(jnp.float32)
    wr = weight.astype(jnp.bfloat16).astype(jnp.float32)
    ref = (xr @ wr + bias[None, :]).reshape(B, S, D_out)

    assert out.shape == (B, S, D_out)
    assert out.dtype == jnp.float32
    assert jnp.allclose(out, ref, atol=1e-3, rtol=1e-3)

    print("KERNEL_OK")
</pallas_src>

<mosaic_0001>
module attributes {stable_mosaic.version = 11 : i64} {
  func.func @_conditioner_kernel(%arg0: i32, %arg1: memref<128x32xbf16, #tpu.memory_space<vmem>>, %arg2: memref<32x128xbf16, #tpu.memory_space<vmem>>, %arg3: memref<1x128xf32, #tpu.memory_space<vmem>>, %arg4: memref<128x128xf32, #tpu.memory_space<vmem>>) attributes {dimension_semantics = [#tpu.dimension_semantics<parallel>], iteration_bounds = array<i64: 2>, scalar_prefetch = 0 : i64, scratch_operands = 0 : i64, tpu.core_type = #tpu.core_type<tc>, window_params = [{transform_indices = @transform_0, window_bounds = array<i64: 128, 32>}, {pipeline_mode = #tpu.pipeline_mode<synchronous>, transform_indices = @transform_1, window_bounds = array<i64: 32, 128>}, {pipeline_mode = #tpu.pipeline_mode<synchronous>, transform_indices = @transform_2, window_bounds = array<i64: 1, 128>}, {transform_indices = @transform_3, window_bounds = array<i64: 128, 128>}]} {
    %c0 = arith.constant 0 : index
    %c0_0 = arith.constant 0 : index
    %0 = vector.load %arg1[%c0, %c0_0] : memref<128x32xbf16, #tpu.memory_space<vmem>>, vector<128x32xbf16>
    %c0_1 = arith.constant 0 : index
    %c0_2 = arith.constant 0 : index
    %1 = vector.load %arg2[%c0_1, %c0_2] : memref<32x128xbf16, #tpu.memory_space<vmem>>, vector<32x128xbf16>
    %cst = arith.constant dense<0.000000e+00> : vector<128x128xf32>
    %2 = tpu.matmul %0, %1, %cst {dimension_numbers = #tpu.dot_dimension_numbers<[1], [0], [0], [1], [0, 0, 1, 1], [], []>} : vector<128x32xbf16>, vector<32x128xbf16>, vector<128x128xf32> -> vector<128x128xf32>
    %c0_3 = arith.constant 0 : index
    %c0_4 = arith.constant 0 : index
    %3 = vector.load %arg3[%c0_3, %c0_4] : memref<1x128xf32, #tpu.memory_space<vmem>>, vector<1x128xf32>
    %4 = vector.broadcast %3 : vector<1x128xf32> to vector<128x128xf32>
    %5 = arith.addf %2, %4 : vector<128x128xf32>
    %c0_5 = arith.constant 0 : index
    %c0_6 = arith.constant 0 : index
    %6 = vector.load %arg4[%c0_5, %c0_6] : memref<128x128xf32, #tpu.memory_space<vmem>>, vector<128x128xf32>
    tpu.vector_store %arg4[%c0_5, %c0_6], %5 {strides = array<i32>} : memref<128x128xf32, #tpu.memory_space<vmem>>, vector<128x128xf32>,
    return
  }
  func.func @transform_0(%arg0: i32) -> (i32, i32) {
    %c0_i32 = arith.constant 0 : i32
    %c0_i32_0 = arith.constant 0 : i32
    return %arg0, %c0_i32 : i32, i32
  }
  func.func @transform_1(%arg0: i32) -> (i32, i32) {
    %c0_i32 = arith.constant 0 : i32
    %c0_i32_0 = arith.constant 0 : i32
    %c0_i32_1 = arith.constant 0 : i32
    return %c0_i32, %c0_i32_0 : i32, i32
  }
  func.func @transform_2(%arg0: i32) -> (i32, i32) {
    %c0_i32 = arith.constant 0 : i32
    %c0_i32_0 = arith.constant 0 : i32
    %c0_i32_1 = arith.constant 0 : i32
    return %c0_i32, %c0_i32_0 : i32, i32
  }
  func.func @transform_3(%arg0: i32) -> (i32, i32) {
    %c0_i32 = arith.constant 0 : i32
    %c0_i32_0 = arith.constant 0 : i32
    return %arg0, %c0_i32 : i32, i32
  }
}

</mosaic_0001>

<bundles_post_ra>
// kernel: tpu_custom_call.1
= control target key start
LH: loop header
LB: loop body
LE: loop exit
PB: predicated region body
PF: predicated region fallthrough
CT: control target
= control target key end

     0   :  { %8 = vsyncpa [#allocation3], 0  ;;  %s812_s0 = inlined_call_operand.vmem [shape: bf16[256,32], index: 0, kind: input, shape index: {}]   ;;  %s813_s1 = inlined_call_operand.vmem [shape: bf16[32,128], index: 1, kind: input, shape index: {}]   ;;  %s814_s2 = inlined_call_operand.vmem [shape: f32[1,128], index: 2, kind: input, shape index: {}]   ;;  %s815_s3 = inlined_call_operand.hbm [shape: f32[256,128], index: 3, kind: output, shape index: {}]  }
   0x1   :  { %10 = vsyncpa [#allocation3 + $0x1], 0  ;;  %s670_s12 = smov 0   ;;  %s672_s13 = smov 0  }
   0x2   :  { %s674_s14 = smov 0   ;;  %s676_s15 = smov 0  }
   0x3 LB: > { %s691_s16 = sadd.s32 4294967295, %s645_s15   ;;  %s466_s17 = sadd.s32 4294967294, %s645_s15   ;;  %s645_s15 = sphi %s676_s15, %s821_s15   ;;  %s641_s14 = sphi %s674_s14, %s820_s14   ;;  %s637_s13 = sphi %s672_s13, %s819_s13   ;;  %s633_s12 = sphi %s670_s12, %s818_s12  }
   0x4   : > { %s695_s18 = sadd.s32 1, %s645_s15   ;;  %s91_s19 = sadd.s32 1, %s641_s14 }
   0x5   : > { %s88_s20 = ssub.s32 %s645_s15, %s695_s18  ;;  %p101_p0 = scmp.ne.s32.totalorder %s641_s14, %s637_s13 }
   0x6   : > { %p89_p1 = scmp.eq.s32.totalorder %s88_s20, 0  ;;  %p102_p2 = scmp.eq.s32.totalorder %s691_s16, 1 }
   0x7   : > { %p107_p3 = scmp.ne.s32.totalorder %s637_s13, %s633_s12  ;;  %p108_p4 = scmp.eq.s32.totalorder %s466_s17, 1 }
   0x8   : > { %s706_s21 = scalar_select %p89_p1, %s641_s14, %s91_s19  }
   0x9   : > { %p708_p5 = por %p102_p2, %p101_p0  ;;  %p712_p6 = por %p108_p4, %p107_p3 }
   0xa   : > { %p469_p7 = scmp.ge.s32.totalorder %s645_s15, 1  ;;  %p141_p8 = scmp.lt.s32.totalorder %s645_s15, 3 }
   0xc   : > { %p142_p9 = pnand %p469_p7, %p141_p8 }
   0xd   : > { %v573_v0 = vld [vmem:[%s813_s1] sm:$0xff] (!%p142_p9)   ;;  %s471_s26 = sshll.u32 (!%p142_p9), %s691_s16, 4  ;;  %v574_v1 = vld [vmem:[%s813_s1 + $0x8] sm:$0xff] (!%p142_p9)   ;;  %vm252_vm0 = vcmask (!%p142_p9), 261120   ;;  %s162_s6 = sand.u32 (!%p142_p9), 1, %s637_s13  }
   0xe   : > { %145 = sbr.rel (%p142_p9) target bundleno = 267 (0x10b), region = 32  ;;  %p166_p10 = scmp.lt.s32.totalorder (!%p142_p9), %s471_s26, 31  ;;  %508 = vmatprep.subr.bf16.mxu0 (!%p142_p9), %v573_v0  ;;  %528 = vmatprep.subr.bf16.mxu1 (!%p142_p9), %v573_v0  ;;  %v473_v10 = vld [vmem:[%s814_s2] ss:$0 sm:$0xff] (!%p142_p9) }
   0xf   : > { %509 = vmatpush3.bf16.msra.mxu0 (!%p142_p9), %v573_v0  ;;  %530 = vmatpush3.bf16.msra.mxu1 (!%p142_p9), %v573_v0  ;;  %s470_s7 = sshll.u32 (!%p142_p9), %s162_s6, 7  ;;  %s497_s11 = sshll.u32 (!%p142_p9), %s691_s16, 11 }
  0x10   : > { %510 = vmatprep.subr.bf16.mxu0 (!%p142_p9), %v574_v1  ;;  %529 = vmatprep.subr.bf16.mxu1 (!%p142_p9), %v574_v1  ;;  %s742_s10 = scalar_lea.vmem (!%p142_p9), [#allocation2], %s470_s7  ;;  %s760_s20 = scalar_lea.hbm (!%p142_p9), %s815_s3, %s497_s11 }
  0x11   : > { %s404_s17 = sshll.u32 (!%p142_p9), %s742_s10, 4  ;;  %s771_s24 = scalar_lea.sflag (!%p142_p9), [#allocation3], %s162_s6  ;;  %s762_s17 = int_to_ptr.vmem [resolvable:$true] %s404_s17 }
  0x12   : > { %s583_s25 = scalar_lea.vmem (!%p142_p9), %s762_s17, 2048 }
  0x13   : > { %511 = vmatpush3.bf16.msra.mxu0 (!%p142_p9), %v574_v1  ;;  %531 = vmatpush3.bf16.msra.mxu1 (!%p142_p9), %v574_v1  ;;  %p584_p11 = scmp.ne.s32.totalorder (!%p142_p9), %s762_s17, %s583_s25 }
  0x15   : > { %s823_s26 = smov (!%p166_p10, %s471_s26), 31  ;;  %p585_p12 = pnand %p584_p11, %p708_p5 }
  0x16   : > { %s472_s29 = sshll.u32 %s823_s26, 2  ;;  %s647_s26 = smov [#allocation2]  }
  0x17   : > { %s169_s5 = scalar_lea.vmem %s812_s0, %s472_s29  ;;  %p586_p13 = pneg %p585_p12 }
  0x18   : > { %v575_v2 = vld [vmem:[%s169_s5] sm:$0xff]   ;;  %v577_v4 = vld [vmem:[%s169_s5 + $0x8] sm:$0xff]   ;;  %v579_v6 = vld [vmem:[%s169_s5 + $0x10] sm:$0xff]   ;;  %s587_s27 = sshll.u32 %s647_s26, 4  ;;  %s588_s27 = int_to_ptr.vmem [resolvable:$false] %s587_s27 }
  0x19   : > { %v576_v3 = vld [vmem:[%s169_s5 + $0x20] sm:$0xff]   ;;  %512 = vmatprep.mubr.msk.bf16.mxu0 %vm252_vm0, %v575_v2  ;;  %v578_v5 = vld [vmem:[%s169_s5 + $0x28] sm:$0xff]   ;;  %v580_v7 = vld [vmem:[%s169_s5 + $0x30] sm:$0xff]   ;;  %s589_s28 = scalar_lea.vmem %s588_s27, 4096  ;;  %p590_p0 = scmp.lt.s32.totalorder %s762_s17, %s588_s27 }
  0x1a   : > { %520 = vmatprep.mubr.msk.bf16.mxu1 %vm252_vm0, %v576_v3  ;;  %513 = vmatmul.mubr.msk.bf16.vlgmr.msra.gmra.mrb[0].mxu0 %vm252_vm0, %v577_v4  ;;  %v581_v8 = vld [vmem:[%s169_s5 + $0x18] sm:$0xff]   ;;  %p591_p1 = scmp.lt.s32.totalorder %s589_s28, %s583_s25 }
  0x1b   : > { %521 = vmatmul.mubr.msk.bf16.vlgmr.msra.gmra.mrb[0].mxu1 %vm252_vm0, %v578_v5  ;;  %516 = vmatprep.mubr.msk.bf16.mxu0 %vm252_vm0, %v579_v6  ;;  %v582_v9 = vld [vmem:[%s169_s5 + $0x38] sm:$0xff]  }
  0x1c   : > { %524 = vmatprep.mubr.msk.bf16.mxu1 %vm252_vm0, %v580_v7  ;;  %p592_p2 = por %p591_p1, %p590_p0 }
  0x1e   : > { %p593_p3 = pnand %p592_p2, %p586_p13 }
  0x22   : > { %517 = vmatmul.mubr.msk.bf16.gmra.mrb[4].mxu0 %vm252_vm0, %v581_v8 }
  0x23   : > { %525 = vmatmul.mubr.msk.bf16.gmra.mrb[4].mxu1 %vm252_vm0, %v582_v9 }
  0xed   : > { %v514_v11 = vpop.f32.mrb[0].mxu0 }
  0xee   : > { %v320_v12 = vadd.f32 %v514_v11, %v473_v10  ;;  %v522_v13 = vpop.f32.mrb[0].mxu1  ;;  %v311_v14 = vpop.f32.mrb[1].mxu0 }
  0xef   : > { %v352_v15 = vadd.f32 %v522_v13, %v473_v10  ;;  %v312_v16 = vadd.f32 %v473_v10, %v311_v14  ;;  %v343_v17 = vpop.f32.mrb[1].mxu1  ;;  %v515_v18 = vpop.f32.mrb[2].mxu0 }
  0xf0   : > { %376 = vst [vmem:[%s742_s10 + $0x10] sm:$0xff] %v320_v12  ;;  %v344_v19 = vadd.f32 %v473_v10, %v343_v17  ;;  %v323_v20 = vadd.f32 %v515_v18, %v473_v10  ;;  %v523_v21 = vpop.f32.mrb[2].mxu1  ;;  %v314_v22 = vpop.f32.mrb[3].mxu0 }
  0xf1   : > { %384 = vst [vmem:[%s742_s10 + $0x50] sm:$0xff] %v352_v15  ;;  %374 = vst [vmem:[%s742_s10] sm:$0xff] %v312_v16  ;;  %v355_v23 = vadd.f32 %v523_v21, %v473_v10  ;;  %v315_v24 = vadd.f32 %v473_v10, %v314_v22  ;;  %v346_v25 = vpop.f32.mrb[3].mxu1 }
  0xf2   : > { %382 = vst [vmem:[%s742_s10 + $0x40] sm:$0xff] %v344_v19  ;;  %377 = vst [vmem:[%s742_s10 + $0x18] sm:$0xff] %v323_v20  ;;  %v347_v26 = vadd.f32 %v473_v10, %v346_v25 }
  0xf3   : > { %385 = vst [vmem:[%s742_s10 + $0x58] sm:$0xff] %v355_v23  ;;  %375 = vst [vmem:[%s742_s10 + $0x8] sm:$0xff] %v315_v24 }
  0xf4   : > { %383 = vst [vmem:[%s742_s10 + $0x48] sm:$0xff] %v347_v26 }
  0xf5   : > { %v518_v27 = vpop.f32.mrb[4].mxu0 }
  0xf6   : > { %v336_v28 = vadd.f32 %v518_v27, %v473_v10  ;;  %v526_v29 = vpop.f32.mrb[4].mxu1  ;;  %v327_v30 = vpop.f32.mrb[5].mxu0 }
  0xf7   : > { %v368_v31 = vadd.f32 %v526_v29, %v473_v10  ;;  %v328_v32 = vadd.f32 %v473_v10, %v327_v30  ;;  %v359_v33 = vpop.f32.mrb[5].mxu1  ;;  %v519_v34 = vpop.f32.mrb[6].mxu0 }
  0xf8   : > { %380 = vst [vmem:[%s742_s10 + $0x30] sm:$0xff] %v336_v28  ;;  %v360_v35 = vadd.f32 %v473_v10, %v359_v33  ;;  %v339_v36 = vadd.f32 %v519_v34, %v473_v10  ;;  %v527_v37 = vpop.f32.mrb[6].mxu1  ;;  %v330_v38 = vpop.f32.mrb[7].mxu0 }
  0xf9   : > { %388 = vst [vmem:[%s742_s10 + $0x70] sm:$0xff] %v368_v31  ;;  %378 = vst [vmem:[%s742_s10 + $0x20] sm:$0xff] %v328_v32  ;;  %v371_v39 = vadd.f32 %v527_v37, %v473_v10  ;;  %v331_v40 = vadd.f32 %v473_v10, %v330_v38  ;;  %v362_v41 = vpop.f32.mrb[7].mxu1 }
  0xfa   : > { %386 = vst [vmem:[%s742_s10 + $0x60] sm:$0xff] %v360_v35  ;;  %381 = vst [vmem:[%s742_s10 + $0x38] sm:$0xff] %v339_v36  ;;  %v363_v42 = vadd.f32 %v473_v10, %v362_v41 }
  0xfb   : > { %389 = vst [vmem:[%s742_s10 + $0x78] sm:$0xff] %v371_v39  ;;  %379 = vst [vmem:[%s742_s10 + $0x28] sm:$0xff] %v331_v40 }
  0xfc   : > { %387 = vst [vmem:[%s742_s10 + $0x68] sm:$0xff] %v363_v42 }
  0xfd   : > { %596 = shalt.err (!%p593_p3)
}
  0xfe   : > { %s597_s29 = scalar_lea.hbm %s760_s20, 2048  ;;  %s601_s5 = scalar_lea.hbm %s815_s3, 4096 }
  0xff   : > { %p598_p4 = scmp.ne.s32.totalorder %s760_s20, %s597_s29  ;;  %p602_p9 = scmp.lt.u32.totalorder %s760_s20, %s815_s3 }
 0x100   : > { %p603_p10 = scmp.lt.u32.totalorder %s601_s5, %s597_s29  ;;  %p605_p12 = scmp.lt.u32.totalorder %s597_s29, %s760_s20 }
 0x101   : > { %p599_p7 = pnand %p598_p4, %p708_p5 }
 0x102   : > { %p604_p11 = por %p603_p10, %p602_p9 }
 0x103   : > { %p600_p8 = pneg %p599_p7 }
 0x104   : > { %p606_p13 = por %p605_p12, %p604_p11 }
 0x106   : > { %p607_p0 = pnand %p606_p13, %p600_p8 }
 0x108   : > { %610 = shalt.err (!%p607_p0)
}
 0x109   : > { %s648_s8 = smov 128   ;;  %s649_s9 = smov 8  }
 0x10a   : > { %532 = dma.vmem_to_hbm [thread:$0]  (%p708_p5), %s762_s17, 2048, %s760_s20, %s771_s24, %s648_s8, %s648_s8, %s649_s9  }
 0x10b PF: > { %p538_p1 = scmp.ge.s32.totalorder %s645_s15, 2  ;;  %s419_s10 = sand.u32 1, %s633_s12  }
 0x10c   : > { %s420_s11 = scalar_lea.sflag [#allocation3], %s419_s10 }
 0x10d   : > { %p535_p2 = pnand %p538_p1, %p712_p6 }
 0x10f   : > { %628 = dma.done.wait (!%p535_p2), %s420_s11, 2048  }
 0x110   : > { %630 = vsyncadd (!%p535_p2), %s420_s11, 4294965248  ;;  %p13_p3 = scmp.ge.s32.totalorder %s695_s18, 4   ;;  %s818_s12 = smov %s637_s13 }
 0x111   : > { %s819_s13 = smov %s641_s14  ;;  %s820_s14 = smov %s706_s21 }
 0x112   : > { %s821_s15 = smov %s695_s18  ;;  %15 = sbr.rel (!%p13_p3) target bundleno = 3 (0x3), region = 67 }
 0x119   :  { %425 = vsyncpa [#allocation3], 1 }
 0x11a   :  { %427 = vsyncpa [#allocation3 + $0x1], 1 }

</bundles_post_ra>
